<compile_context>
chip_gen: v5e
topology: v5e:2x2
jax: 0.10.0
libtpu: 0.0.40
codegen_flags: <defaults>
</compile_context>

<pallas_src>
import functools

import jax
import jax.numpy as jnp
from jax import lax
from jax.experimental import pallas as pl
from jax.experimental.pallas import tpu as pltpu

_EPS = 1e-6
_VMEM_LIMIT = 48 * 1024 * 1024  # explicit scoped-VMEM budget (safe on v5e/v6e/v7x)


def _pick_q_tile(s, target=256):
    """Largest multiple-of-8 divisor of s that is <= target (or s itself)."""
    if s <= target:
        return s
    t = (target // 8) * 8
    while t >= 8:
        if s % t == 0:
            return t
        t -= 8
    return s


def _pick_k_tile(s, target=512):
    """Largest multiple-of-128 divisor of s that is <= target (or s itself).

    Key tiles must be lane-aligned because the per-key scalar c is carried in a
    (1, S) lane-major layout.
    """
    if s <= target:
        return s
    t = (target // 128) * 128
    while t >= 128:
        if s % t == 0:
            return t
        t -= 128
    return s


# --------------------------------------------------------------------------- #
# Pass 1: RMSNorm1 + fused (k . q) scalar + value projection                   #
# --------------------------------------------------------------------------- #
def _kv_proj_kernel(x_ref, n1w_ref, wkq_ref, vw_ref, c_ref, v_ref, *, eps):
    f32 = jnp.float32
    x = x_ref[...].astype(f32)                                   # (Tk, H)

    # RMSNorm1 (Qwen2RMSNorm: f32 variance, then weight scale).
    var = jnp.mean(x * x, axis=-1, keepdims=True)
    xn = x * lax.rsqrt(var + eps) * n1w_ref[...].astype(f32)

    # Rank-1 q exploit: scores only ever need c[j] = k[j] . q_w = xn[j] . (Wk^T q_w).
    # Pure VPU multiply + lane reduce — no k-projection matmul at all.
    c_ref[...] = jnp.sum(xn * wkq_ref[...].astype(f32), axis=-1, keepdims=True)

    # Value projection on the MXU, f32 accumulation, stored in compute dtype.
    v_ref[...] = jnp.dot(xn.astype(vw_ref.dtype), vw_ref[...],
                         preferred_element_type=f32).astype(v_ref.dtype)


# --------------------------------------------------------------------------- #
# Pass 2: flash attention over key tiles + o_proj + RMSNorm2 + SwiGLU MLP      #
# --------------------------------------------------------------------------- #
def _attn_mlp_kernel(x_ref, hm_ref, c_ref, v_ref, ow_ref, n2w_ref,
                     gw_ref, uw_ref, dw_ref, out_ref,
                     m_sc, l_sc, acc_sc, *, scale, eps):
    f32 = jnp.float32
    kj = pl.program_id(1)

    @pl.when(kj == 0)
    def _init():
        m_sc[...] = jnp.full_like(m_sc, -jnp.inf)
        l_sc[...] = jnp.zeros_like(l_sc)
        acc_sc[...] = jnp.zeros_like(acc_sc)

    # Rank-1 scores: s[i, j] = (scale * heatmap[i]) * c[j].
    # (Tq,1) x (1,Tk) broadcast multiply — cheap VPU work, no MXU pass, and the
    # full (S,S) score matrix is never materialized (only a (Tq,Tk) block).
    t = hm_ref[...].astype(f32) * scale                          # (Tq, 1)
    s = t * c_ref[...]                                           # (Tq, Tk) f32

    # Online (flash) softmax accumulation.
    m_prev = m_sc[...]
    m_new = jnp.maximum(m_prev, jnp.max(s, axis=-1, keepdims=True))
    alpha = jnp.exp(m_prev - m_new)
    p = jnp.exp(s - m_new)
    l_sc[...] = alpha * l_sc[...] + jnp.sum(p, axis=-1, keepdims=True)
    acc_sc[...] = alpha * acc_sc[...] + jnp.dot(
        p.astype(v_ref.dtype), v_ref[...], preferred_element_type=f32)
    m_sc[...] = m_new

    # Epilogue fused on the last key tile while the query tile is resident.
    @pl.when(kj == pl.num_programs(1) - 1)
    def _finalize():
        # EUP approximate reciprocal for the softmax denominator (co-issues).
        attn = acc_sc[...] * pl.reciprocal(l_sc[...], approx=True)
        attn = jnp.dot(attn.astype(ow_ref.dtype), ow_ref[...],
                       preferred_element_type=f32)               # o_proj
        h = x_ref[...].astype(f32) + attn                        # residual 1

        # RMSNorm2 (kept in f32 for all chips; slight dtype-fidelity delta vs
        # PyTorch's downcast-before-weight for bf16 inputs — documented).
        var2 = jnp.mean(h * h, axis=-1, keepdims=True)
        hn = h * lax.rsqrt(var2 + eps) * n2w_ref[...].astype(f32)

        # Qwen2_5_VLMLP: down( silu(gate(x)) * up(x) ).
        hn_c = hn.astype(gw_ref.dtype)
        g = jnp.dot(hn_c, gw_ref[...], preferred_element_type=f32)
        u = jnp.dot(hn_c, uw_ref[...], preferred_element_type=f32)
        act = g * jax.nn.sigmoid(g)                              # SiLU in f32
        mlp = jnp.dot((act * u).astype(dw_ref.dtype), dw_ref[...],
                      preferred_element_type=f32)
        out_ref[...] = (h + mlp).astype(out_ref.dtype)           # residual 2


# --------------------------------------------------------------------------- #
# Parameter preparation (one-time, outside the per-call path)                  #
# --------------------------------------------------------------------------- #
def prepare_params(params, compute_dtype=jnp.float32):
    """Transpose PyTorch (out,in) Linear weights to (in,out), fold q_proj into
    k_proj (rank-1 exploit) and cast matmul weights to the MXU compute dtype."""
    H = params["k_w"].shape[0]
    # c[j] = xn[j] . (Wk^T @ q_w)  — fold the two projections into one vector.
    wkq = params["k_w"].astype(jnp.float32).T @ params["q_w"].astype(jnp.float32)
    return {
        "norm1_w": params["norm1_w"].reshape(1, H).astype(jnp.float32),
        "norm2_w": params["norm2_w"].reshape(1, H).astype(jnp.float32),
        "wkq": wkq.reshape(1, H),                              # f32, used on VPU
        "v_wT": params["v_w"].T.astype(compute_dtype),         # (H, H)
        "o_wT": params["o_w"].T.astype(compute_dtype),         # (H, H)
        "gate_wT": params["gate_w"].T.astype(compute_dtype),   # (H, I)
        "up_wT": params["up_w"].T.astype(compute_dtype),       # (H, I)
        "down_wT": params["down_w"].T.astype(compute_dtype),   # (I, H)
    }


def heatmap_head_forward(hidden_states, heatmap, prepared,
                         *, q_tile=256, k_tile=512):
    """hidden_states: (S, H), heatmap: (S, 1). Returns (S, H) in input dtype."""
    S, H = hidden_states.shape
    I = prepared["gate_wT"].shape[1]
    cdt = prepared["v_wT"].dtype
    scale = float(H) ** -0.5          # head_dim ** -0.5, num_heads == 1
    tq = _pick_q_tile(S, q_tile)
    tk = _pick_k_tile(S, k_tile)
    nq, nk = S // tq, S // tk

    cparams1 = pltpu.CompilerParams(
        dimension_semantics=("parallel",), vmem_limit_bytes=_VMEM_LIMIT)
    cparams2 = pltpu.CompilerParams(
        dimension_semantics=("parallel", "arbitrary"),
        vmem_limit_bytes=_VMEM_LIMIT)

    # ---- pass 1: per-key scalar c and value projection (computed once) ----
    kv_kernel = functools.partial(_kv_proj_kernel, eps=_EPS)
    c, v = pl.pallas_call(
        kv_kernel,
        grid=(nk,),
        in_specs=[
            pl.BlockSpec((tk, H), lambda i: (i, 0)),     # x tile streams
            pl.BlockSpec((1, H), lambda i: (0, 0)),      # norm1_w  (resident)
            pl.BlockSpec((1, H), lambda i: (0, 0)),      # wkq      (resident)
            pl.BlockSpec((H, H), lambda i: (0, 0)),      # v_wT     (resident)
        ],
        out_specs=(
            pl.BlockSpec((tk, 1), lambda i: (i, 0)),     # c
            pl.BlockSpec((tk, H), lambda i: (i, 0)),     # v
        ),
        out_shape=(
            jax.ShapeDtypeStruct((S, 1), jnp.float32),
            jax.ShapeDtypeStruct((S, H), cdt),
        ),
        compiler_params=cparams1,
    )(hidden_states, prepared["norm1_w"], prepared["wkq"], prepared["v_wT"])

    # Lay c out lane-major (1, S) so pass 2 scores are a pure broadcast multiply.
    c_row = c.reshape(1, S)

    # ---- pass 2: flash attention + o_proj + RMSNorm2 + MLP, fused ----
    attn_kernel = functools.partial(_attn_mlp_kernel, scale=scale, eps=_EPS)
    out = pl.pallas_call(
        attn_kernel,
        grid=(nq, nk),
        in_specs=[
            pl.BlockSpec((tq, H), lambda qi, kj: (qi, 0)),   # x (residual)
            pl.BlockSpec((tq, 1), lambda qi, kj: (qi, 0)),   # heatmap
            pl.BlockSpec((1, tk), lambda qi, kj: (0, kj)),   # c (key tile)
            pl.BlockSpec((tk, H), lambda qi, kj: (kj, 0)),   # v (key tile)
            pl.BlockSpec((H, H), lambda qi, kj: (0, 0)),     # o_wT     (resident)
            pl.BlockSpec((1, H), lambda qi, kj: (0, 0)),     # norm2_w  (resident)
            pl.BlockSpec((H, I), lambda qi, kj: (0, 0)),     # gate_wT  (resident)
            pl.BlockSpec((H, I), lambda qi, kj: (0, 0)),     # up_wT    (resident)
            pl.BlockSpec((I, H), lambda qi, kj: (0, 0)),     # down_wT  (resident)
        ],
        out_specs=pl.BlockSpec((tq, H), lambda qi, kj: (qi, 0)),
        out_shape=jax.ShapeDtypeStruct((S, H), hidden_states.dtype),
        scratch_shapes=[
            pltpu.VMEM((tq, 1), jnp.float32),   # running max
            pltpu.VMEM((tq, 1), jnp.float32),   # running denom
            pltpu.VMEM((tq, H), jnp.float32),   # output accumulator
        ],
        compiler_params=cparams2,
    )(hidden_states, heatmap, c_row, v,
      prepared["o_wT"], prepared["norm2_w"],
      prepared["gate_wT"], prepared["up_wT"], prepared["down_wT"])
    return out


# --------------------------------------------------------------------------- #
# Pure-JAX reference (mirrors the PyTorch module, position_embeddings=None)    #
# --------------------------------------------------------------------------- #
def _reference_forward(hidden_states, heatmap, params):
    H = hidden_states.shape[-1]
    eps = 1e-6
    scale = float(H) ** -0.5

    def rmsnorm(x, w):
        var = jnp.mean(x.astype(jnp.float32) ** 2, axis=-1, keepdims=True)
        return (x * lax.rsqrt(var + eps)) * w

    residual = hidden_states
    x = rmsnorm(hidden_states, params["norm1_w"])
    q = heatmap @ params["q_w"].T
    k = x @ params["k_w"].T
    v = x @ params["v_w"].T
    attn_w = jax.nn.softmax((q @ k.T) * scale, axis=-1)
    attn = (attn_w @ v) @ params["o_w"].T
    h = residual + attn

    hn = rmsnorm(h, params["norm2_w"])
    g = hn @ params["gate_w"].T
    u = hn @ params["up_w"].T
    mlp = (jax.nn.silu(g) * u) @ params["down_w"].T
    return h + mlp


if __name__ == "__main__":
    SEQ, HIDDEN, INTERMEDIATE = 8, 32, 64

    key = jax.random.PRNGKey(0)
    keys = jax.random.split(key, 10)

    # Deterministic synthetic parameters (PyTorch Linear weight shape: (out, in)).
    params = {
        "norm1_w": jnp.ones((HIDDEN,), jnp.float32),
        "norm2_w": jnp.ones((HIDDEN,), jnp.float32),
        "q_w":    0.1 * jax.random.normal(keys[0], (HIDDEN, 1), jnp.float32),
        "k_w":    0.1 * jax.random.normal(keys[1], (HIDDEN, HIDDEN), jnp.float32),
        "v_w":    0.1 * jax.random.normal(keys[2], (HIDDEN, HIDDEN), jnp.float32),
        "o_w":    0.1 * jax.random.normal(keys[3], (HIDDEN, HIDDEN), jnp.float32),
        "gate_w": 0.1 * jax.random.normal(keys[4], (INTERMEDIATE, HIDDEN), jnp.float32),
        "up_w":   0.1 * jax.random.normal(keys[5], (INTERMEDIATE, HIDDEN), jnp.float32),
        "down_w": 0.1 * jax.random.normal(keys[6], (HIDDEN, INTERMEDIATE), jnp.float32),
    }

    hidden_states = jax.random.normal(keys[7], (SEQ, HIDDEN), jnp.float32)
    heatmap = jax.random.uniform(keys[8], (SEQ, 1), jnp.float32)

    ref = _reference_forward(hidden_states, heatmap, params)

    # f32 path (tight tolerance; approx reciprocal contributes ~1e-4).
    prep_f32 = prepare_params(params, jnp.float32)
    out = jax.block_until_ready(
        heatmap_head_forward(hidden_states, heatmap, prep_f32))
    assert out.shape == (SEQ, HIDDEN)
    assert jnp.allclose(out, ref, atol=2e-3, rtol=2e-3), "f32 mismatch vs reference"

    # bf16-weight path (MXU-native matmuls, f32 accumulation; loose tolerance).
    prep_bf16 = prepare_params(params, jnp.bfloat16)
    out_bf16 = jax.block_until_ready(
        heatmap_head_forward(hidden_states.astype(jnp.bfloat16),
                             heatmap.astype(jnp.bfloat16), prep_bf16))
    assert out_bf16.dtype == jnp.bfloat16
    assert jnp.allclose(out_bf16.astype(jnp.float32), ref, atol=1e-1, rtol=1e-1), \
        "bf16 mismatch vs reference"

    print("KERNEL_OK")
</pallas_src>

<mosaic_0001>
module attributes {stable_mosaic.version = 11 : i64} {
  func.func @_kv_proj_kernel(%arg0: i32, %arg1: memref<8x32xf32, #tpu.memory_space<vmem>>, %arg2: memref<1x32xf32, #tpu.memory_space<vmem>>, %arg3: memref<1x32xf32, #tpu.memory_space<vmem>>, %arg4: memref<32x32xf32, #tpu.memory_space<vmem>>, %arg5: memref<8x1xf32, #tpu.memory_space<vmem>>, %arg6: memref<8x32xf32, #tpu.memory_space<vmem>>) attributes {dimension_semantics = [#tpu.dimension_semantics<parallel>], iteration_bounds = array<i64: 1>, scalar_prefetch = 0 : i64, scratch_operands = 0 : i64, tpu.core_type = #tpu.core_type<tc>, window_params = [{transform_indices = @transform_0, window_bounds = array<i64: 8, 32>}, {pipeline_mode = #tpu.pipeline_mode<synchronous>, transform_indices = @transform_1, window_bounds = array<i64: 1, 32>}, {pipeline_mode = #tpu.pipeline_mode<synchronous>, transform_indices = @transform_2, window_bounds = array<i64: 1, 32>}, {pipeline_mode = #tpu.pipeline_mode<synchronous>, transform_indices = @transform_3, window_bounds = array<i64: 32, 32>}, {transform_indices = @transform_4, window_bounds = array<i64: 8, 1>}, {transform_indices = @transform_5, window_bounds = array<i64: 8, 32>}]} {
    %c0 = arith.constant 0 : index
    %c0_0 = arith.constant 0 : index
    %0 = vector.load %arg1[%c0, %c0_0] : memref<8x32xf32, #tpu.memory_space<vmem>>, vector<8x32xf32>
    %1 = arith.mulf %0, %0 : vector<8x32xf32>
    %cst = arith.constant dense<0.000000e+00> : vector<8xf32>
    %2 = vector.multi_reduction <add>, %1, %cst [1] : vector<8x32xf32> to vector<8xf32>
    %3 = vector.shape_cast %2 : vector<8xf32> to vector<8x1xf32>
    %cst_1 = arith.constant 3.200000e+01 : f32
    %4 = vector.broadcast %cst_1 : f32 to vector<8x1xf32>
    %5 = arith.divf %3, %4 : vector<8x1xf32>
    %cst_2 = arith.constant 9.99999997E-7 : f32
    %6 = vector.broadcast %cst_2 : f32 to vector<8x1xf32>
    %7 = arith.addf %5, %6 : vector<8x1xf32>
    %8 = math.rsqrt %7 : vector<8x1xf32>
    %9 = vector.broadcast %8 : vector<8x1xf32> to vector<8x32xf32>
    %10 = arith.mulf %0, %9 : vector<8x32xf32>
    %c0_3 = arith.constant 0 : index
    %c0_4 = arith.constant 0 : index
    %11 = vector.load %arg2[%c0_3, %c0_4] : memref<1x32xf32, #tpu.memory_space<vmem>>, vector<1x32xf32>
    %12 = vector.broadcast %11 : vector<1x32xf32> to vector<8x32xf32>
    %13 = arith.mulf %10, %12 : vector<8x32xf32>
    %c0_5 = arith.constant 0 : index
    %c0_6 = arith.constant 0 : index
    %14 = vector.load %arg3[%c0_5, %c0_6] : memref<1x32xf32, #tpu.memory_space<vmem>>, vector<1x32xf32>
    %15 = vector.broadcast %14 : vector<1x32xf32> to vector<8x32xf32>
    %16 = arith.mulf %13, %15 : vector<8x32xf32>
    %cst_7 = arith.constant dense<0.000000e+00> : vector<8xf32>
    %17 = vector.multi_reduction <add>, %16, %cst_7 [1] : vector<8x32xf32> to vector<8xf32>
    %18 = vector.shape_cast %17 : vector<8xf32> to vector<8x1xf32>
    %c0_8 = arith.constant 0 : index
    %c0_9 = arith.constant 0 : index
    %19 = vector.load %arg5[%c0_8, %c0_9] : memref<8x1xf32, #tpu.memory_space<vmem>>, vector<8x1xf32>
    tpu.vector_store %arg5[%c0_8, %c0_9], %18 {strides = array<i32>} : memref<8x1xf32, #tpu.memory_space<vmem>>, vector<8x1xf32>,
    %c0_10 = arith.constant 0 : index
    %c0_11 = arith.constant 0 : index
    %20 = vector.load %arg4[%c0_10, %c0_11] : memref<32x32xf32, #tpu.memory_space<vmem>>, vector<32x32xf32>
    %cst_12 = arith.constant dense<0.000000e+00> : vector<8x32xf32>
    %21 = tpu.matmul %13, %20, %cst_12 {dimension_numbers = #tpu.dot_dimension_numbers<[1], [0], [0], [1], [0, 0, 1, 1], [], []>} : vector<8x32xf32>, vector<32x32xf32>, vector<8x32xf32> -> vector<8x32xf32>
    %c0_13 = arith.constant 0 : index
    %c0_14 = arith.constant 0 : index
    %22 = vector.load %arg6[%c0_13, %c0_14] : memref<8x32xf32, #tpu.memory_space<vmem>>, vector<8x32xf32>
    tpu.vector_store %arg6[%c0_13, %c0_14], %21 {strides = array<i32>} : memref<8x32xf32, #tpu.memory_space<vmem>>, vector<8x32xf32>,
    return
  }
  func.func @transform_0(%arg0: i32) -> (i32, i32) {
    %c0_i32 = arith.constant 0 : i32
    %c0_i32_0 = arith.constant 0 : i32
    return %arg0, %c0_i32 : i32, i32
  }
  func.func @transform_1(%arg0: i32) -> (i32, i32) {
    %c0_i32 = arith.constant 0 : i32
    %c0_i32_0 = arith.constant 0 : i32
    %c0_i32_1 = arith.constant 0 : i32
    return %c0_i32, %c0_i32_0 : i32, i32
  }
  func.func @transform_2(%arg0: i32) -> (i32, i32) {
    %c0_i32 = arith.constant 0 : i32
    %c0_i32_0 = arith.constant 0 : i32
    %c0_i32_1 = arith.constant 0 : i32
    return %c0_i32, %c0_i32_0 : i32, i32
  }
  func.func @transform_3(%arg0: i32) -> (i32, i32) {
    %c0_i32 = arith.constant 0 : i32
    %c0_i32_0 = arith.constant 0 : i32
    %c0_i32_1 = arith.constant 0 : i32
    return %c0_i32, %c0_i32_0 : i32, i32
  }
  func.func @transform_4(%arg0: i32) -> (i32, i32) {
    %c0_i32 = arith.constant 0 : i32
    %c0_i32_0 = arith.constant 0 : i32
    return %arg0, %c0_i32 : i32, i32
  }
  func.func @transform_5(%arg0: i32) -> (i32, i32) {
    %c0_i32 = arith.constant 0 : i32
    %c0_i32_0 = arith.constant 0 : i32
    return %arg0, %c0_i32 : i32, i32
  }
}

</mosaic_0001>

<bundles_post_ra>
// kernel: tpu_custom_call.1
= control target key start
LH: loop header
LB: loop body
LE: loop exit
PB: predicated region body
PF: predicated region fallthrough
CT: control target
= control target key end

     0   :  { %11 = vsyncpa [#allocation3], 0  ;;  %s329_s0 = inlined_call_operand.hbm [shape: f32[8,32], index: 0, kind: input, shape index: {}]   ;;  %s330_s1 = inlined_call_operand.hbm [shape: f32[1,32], index: 1, kind: input, shape index: {}]   ;;  %s331_s2 = inlined_call_operand.vmem [shape: f32[1,32], index: 2, kind: input, shape index: {}]   ;;  %s332_s3 = inlined_call_operand.hbm [shape: f32[32,32], index: 3, kind: input, shape index: {}]   ;;  %s333_s4 = inlined_call_operand.vmem [shape: f32[8,1], index: 4, kind: output, shape index: {0}]   ;;  %s334_s5 = inlined_call_operand.hbm [shape: f32[8,32], index: 5, kind: output, shape index: {1}]  }
   0x1   :  { %12 = vsyncpa [#allocation6], 0  ;;  %s30_s20 = sshll.u32 %s330_s1, 4  ;;  %s31_s20 = int_to_ptr.hbm [resolvable:$true] %s30_s20 }
   0x2   :  { %13 = vsyncpa [#allocation4], 0  ;;  %s270_s21 = smov [#allocation5]   ;;  %s19_s25 = sshll.u32 %s329_s0, 4  ;;  %s20_s25 = int_to_ptr.hbm [resolvable:$true] %s19_s25 }
   0x3   :  { %s32_s22 = sshll.u32 %s270_s21, 4  ;;  %s271_s26 = smov [#allocation2]   ;;  %s33_s22 = int_to_ptr.vmem [resolvable:$true] %s32_s22 }
   0x4   :  { %35 = dma.hbm_to_vmem [thread:$0]  %s31_s20, 16, %s33_s22, [#allocation6]  }
   0x5   :  { %s21_s27 = sshll.u32 %s271_s26, 4  ;;  %s42_s30 = sshll.u32 %s332_s3, 4  ;;  %s22_s27 = int_to_ptr.vmem [resolvable:$true] %s21_s27  ;;  %s43_s30 = int_to_ptr.hbm [resolvable:$true] %s42_s30 }
   0x6   :  { %24 = dma.hbm_to_vmem [thread:$0]  %s20_s25, 128, %s22_s27, [#allocation3]  }
   0x7   :  { %s272_s1 = smov [#allocation7]   ;;  %s273_s7 = smov 128  }
   0x8   :  { %s44_s6 = sshll.u32 %s272_s1, 4  ;;  %s274_s8 = smov 8   ;;  %s45_s6 = int_to_ptr.vmem [resolvable:$true] %s44_s6 }
   0x9   :  { %50 = dma.hbm_to_vmem [thread:$0]  %s43_s30, 512, %s45_s6, [#allocation6], %s273_s7, %s273_s7, %s274_s8  }
   0xa   :  { %264 = dma.done.wait [#allocation3], 128  }
   0xb   :  { %265 = vsyncadd [#allocation3], 4294967168 }
   0xc   :  { %266 = dma.done.wait [#allocation6], 528  }
   0xd   :  { %267 = vsyncadd [#allocation6], 4294966768  ;;  %v63_v0 = vld [vmem:[#allocation2] sm:$0xff]  ;;  %vm65_vm0 = vcmask 261120   ;;  %v275_v3 = vmov 32.0   ;;  %v105_v9 = vld [vmem:[#allocation7 + $0x8] sm:$0xff] }
   0xe   :  { %v64_v1 = vmul.f32 %v63_v0, %v63_v0  ;;  %164 = vrcp.f32 %v275_v3  ;;  %v107_v7 = vld [vmem:[#allocation7 + $0x18] sm:$0xff]  ;;  %v106_v8 = vld [vmem:[#allocation7 + $0x10] sm:$0xff]  ;;  %v104_v11 = vld [vmem:[#allocation7] sm:$0xff]  ;;  %vm102_vm5 = vcmask 7168   ;;  %s276_s11 = smov [#allocation8]   ;;  %s141_s15 = sshll.u32 %s334_s5, 4  ;;  %s142_s15 = int_to_ptr.hbm [resolvable:$true] %s141_s15 }
   0xf   :  { %123 = vmatpush.msra.mxu0 %v107_v7  ;;  %v162_v23 = vld [vmem:[#allocation5] ss:$0 sm:$0xff]  ;;  %v163_v26 = vld [vmem:[%s331_s2] ss:$0 sm:$0xff]  ;;  %s139_s12 = sshll.u32 %s276_s11, 4  ;;  %s140_s12 = int_to_ptr.vmem [resolvable:$true] %s139_s12 }
  0x10   :  { %v66_v2 = vsel %vm65_vm0, %v64_v1, 0.0 }
  0x11   :  { %67 = vadd.xlane.f32.xlu0 %v66_v2  ;;  %124 = vmatpush.msra.mxu0 %v106_v8 }
  0x13   :  { %125 = vmatpush.msra.mxu0 %v105_v9 }
  0x14   :  { %v165_v4 = vpop.eup %164 }
  0x15   :  { %v70_v5 = vmul.f32 32.0, %v165_v4  ;;  %126 = vmatpush.msra.mxu0 %v104_v11  ;;  %vm74_vm1 = vweird.f32 %v165_v4 }
  0x17   :  { %v71_v6 = vsub.f32 1.0, %v70_v5 }
  0x19   :  { %v72_v10 = vmul.f32 %v165_v4, %v71_v6 }
  0x1b   :  { %v73_v12 = vadd.f32 %v165_v4, %v72_v10 }
  0x1d   :  { %v75_v13 = vsel %vm74_vm1, %v165_v4, %v73_v12 }
  0x84   :  { %v68_v14 = vpop.xlane.xlu0 %67 }
  0x85   :  { %v76_v15 = vmul.f32 %v75_v13, %v68_v14 }
  0x87   :  { %v77_v16 = vadd.f32 1e-06, %v76_v15 }
  0x89   :  { %166 = vrsqrt.f32 %v77_v16  ;;  %vm84_vm3 = vweird.f32 %v77_v16 }
  0x8f   :  { %v167_v17 = vpop.eup %166 }
  0x90   :  { %v79_v18 = vmul.f32 %v167_v17, %v77_v16  ;;  %vm85_vm2 = vweird.f32 %v167_v17 }
  0x91   :  { %vm86_vm4 = vmor %vm84_vm3, %vm85_vm2 }
  0x92   :  { %v80_v19 = vmul.f32 %v167_v17, %v79_v18 }
  0x94   :  { %v81_v20 = vmul.f32 0.5, %v80_v19 }
  0x96   :  { %v82_v21 = vsub.f32 1.5, %v81_v20 }
  0x98   :  { %v83_v22 = vmul.f32 %v167_v17, %v82_v21 }
  0x9a   :  { %v87_v24 = vsel %vm86_vm4, %v167_v17, %v83_v22 }
  0x9b   :  { %v88_v25 = vmul.f32 %v87_v24, %v63_v0 }
  0x9d   :  { %v93_v27 = vmul.f32 %v162_v23, %v88_v25 }
  0x9f   :  { %154 = vmatmul.msk.f32.vlgmr.msra.gmra.mxu0 %vm65_vm0, %v93_v27  ;;  %v98_v28 = vmul.f32 %v163_v26, %v93_v27 }
  0xa1   :  { %v99_v29 = vsel %vm65_vm0, %v98_v28, 0.0 }
  0xa2   :  { %100 = vadd.xlane.f32.xlu0 %v99_v29 }
 0x115   :  { %v101_v30 = vpop.xlane.xlu0 %100 }
 0x116   :  { %103 = vst.msk [vmem:[%s333_s4] sm:$0xff] %vm102_vm5, %v101_v30 }
 0x11c   :  { %v128_v31 = vpop.f32.mrf.mxu0 }
 0x11d   :  { %131 = vst.msk [vmem:[#allocation8] sm:$0xff] %vm65_vm0, %v128_v31 }
 0x11e   :  { %144 = dma.vmem_to_hbm [thread:$0]  %s140_s12, 128, %s142_s15, [#allocation4]  }
 0x11f   :  { %268 = dma.done.wait [#allocation4], 128  }
 0x120   :  { %269 = vsyncadd [#allocation4], 4294967168 }
 0x121   :  { %151 = vsyncpa [#allocation3], 1 }
 0x122   :  { %152 = vsyncpa [#allocation6], 1 }
 0x123   :  { %153 = vsyncpa [#allocation4], 1 }

</bundles_post_ra>
